<compile_context>
chip_gen: v5e
topology: v5e:2x2
jax: 0.10.0
libtpu: 0.0.40
codegen_flags: <defaults>
</compile_context>

<pallas_src>
import functools

import jax
import jax.numpy as jnp
from jax import lax
from jax.experimental import pallas as pl
from jax.experimental.pallas import tpu as pltpu


def _round_up(n, m):
    return ((n + m - 1) // m) * m


def _cdiv(a, b):
    return (a + b - 1) // b


# ---------------------------------------------------------------------------
# Device / layout helpers
# ---------------------------------------------------------------------------

def _device_info():
    """Returns (physical VMEM bytes per TensorCore, two-TC chip?, MXU rows)."""
    kind = ""
    try:
        kind = jax.devices()[0].device_kind.lower()
    except Exception:
        pass
    is_v7 = "v7" in kind
    is_v5 = "v5" in kind
    vmem = None
    try:
        vmem = int(pltpu.get_tpu_info().vmem_capacity_bytes)
    except Exception:
        vmem = None
    if vmem is None:
        vmem = (64 if is_v7 else 128) * 1024 * 1024
    return vmem, is_v7, (128 if is_v5 else 256)


@functools.cache
def _roll_is_jnp_convention():
    """Probe pltpu.roll once (jnp.roll convention: out[j] = in[(j - s) % n])."""
    def probe(x_ref, o_ref):
        o_ref[...] = pltpu.roll(x_ref[...], 1, axis=1)

    x = jnp.broadcast_to(jnp.arange(128, dtype=jnp.float32)[None, :], (8, 128))
    y = pl.pallas_call(
        probe, out_shape=jax.ShapeDtypeStruct((8, 128), jnp.float32))(x)
    return bool(jax.device_get(y)[0, 0] == 127.0)


def _shift_to_front(offset, width):
    """pltpu.roll shift that moves lane `offset` to lane 0 (of `width` lanes)."""
    if offset % width == 0:
        return 0
    if _roll_is_jnp_convention():
        return (width - offset) % width
    return offset % width


# ---------------------------------------------------------------------------
# Kernel
# ---------------------------------------------------------------------------

def make_lstm_kernel(num_layers, T, Tc, Bt, H, Hp, Gt, Ip, packed, unroll,
                     shifts):
    """`num_layers` LSTM layers + FC head over one batch tile of Bt rows."""

    def kernel(*refs):
        x_ref = refs[0]                                     # (T, Bt, Ip)  bf16
        layer_refs = refs[1:1 + 3 * num_layers]
        wfc_ref = refs[1 + 3 * num_layers]                  # (Hp, Op)     bf16
        bfc_ref = refs[2 + 3 * num_layers]                  # (1, Op)      f32
        out_ref = refs[3 + 3 * num_layers]                  # (Bt, Op)     f32
        gates_ref = refs[4 + 3 * num_layers]                # (Tc*Bt, Gt)  f32
        seq_ref = (refs[5 + 3 * num_layers]                 # (T*Bt, Hp)   bf16
                   if num_layers > 1 else None)

        h = None
        for layer in range(num_layers):
            w_ih_T = layer_refs[3 * layer + 0][...]         # (in_p, Gt) bf16
            w_hh_T = layer_refs[3 * layer + 1][...]         # (Hp, Gt)   bf16
            b = layer_refs[3 * layer + 2][...]              # (1, Gt)    f32
            is_last = layer == num_layers - 1

            def run_chunk(c0, tcur, h, c, w_ih_T=w_ih_T, w_hh_T=w_hh_T, b=b,
                          is_last=is_last, layer=layer):
                """Hoisted input projection for `tcur` timesteps starting at
                (possibly dynamic) timestep c0, then the serial recurrence."""
                rows = tcur * Bt
                if layer == 0:
                    seq_in = x_ref[pl.ds(c0, tcur), :, :].reshape(rows, Ip)
                else:
                    base = pl.multiple_of(c0 * Bt, 8)
                    seq_in = seq_ref[pl.ds(base, rows), :]
                # One MXU matmul per chunk into the bounded f32 gates scratch.
                gates_ref[pl.ds(0, rows), :] = (
                    jnp.dot(seq_in, w_ih_T, preferred_element_type=jnp.float32)
                    + b)

                def step(t, carry):
                    h, c = carry                            # (Bt, Hp) f32
                    row = pl.multiple_of(t * Bt, 8)
                    gates = gates_ref[pl.ds(row, Bt), :] + jnp.dot(
                        h.astype(jnp.bfloat16), w_hh_T,
                        preferred_element_type=jnp.float32)
                    if packed:
                        # Packed gate lanes [i|f|o|g] (H lanes each, padded to
                        # Gt): one sigmoid + one tanh over the packed block
                        # (min EUP vregs), XLU rolls realign f/o/g to lane 0.
                        sig = jax.nn.sigmoid(gates)
                        tnh = jnp.tanh(gates)
                        i_g = sig[:, :Hp]
                        f_g = pltpu.roll(sig, shifts[0], axis=1)[:, :Hp]
                        o_g = pltpu.roll(sig, shifts[1], axis=1)[:, :Hp]
                        g_g = pltpu.roll(tnh, shifts[2], axis=1)[:, :Hp]
                    else:
                        # Hp-aligned gate lanes [ i | f | o | g ].
                        sig = jax.nn.sigmoid(gates[:, :3 * Hp])
                        i_g = sig[:, 0 * Hp:1 * Hp]
                        f_g = sig[:, 1 * Hp:2 * Hp]
                        o_g = sig[:, 2 * Hp:3 * Hp]
                        g_g = jnp.tanh(gates[:, 3 * Hp:])
                    c_new = f_g * c + i_g * g_g
                    h_new = o_g * jnp.tanh(c_new)
                    if not is_last:
                        grow = pl.multiple_of(c0 * Bt + row, 8)
                        seq_ref[pl.ds(grow, Bt), :] = h_new.astype(jnp.bfloat16)
                    return (h_new, c_new)

                return lax.fori_loop(0, tcur, step, (h, c), unroll=unroll)

            h = jnp.zeros((Bt, Hp), jnp.float32)
            c = jnp.zeros((Bt, Hp), jnp.float32)
            n_full = T // Tc
            if n_full > 0:
                def chunk_body(k, carry, run_chunk=run_chunk):
                    return run_chunk(k * Tc, Tc, *carry)
                h, c = lax.fori_loop(0, n_full, chunk_body, (h, c))
            if T % Tc:
                h, c = run_chunk(n_full * Tc, T % Tc, h, c)

        # out = dropout(h_T) (eval-mode identity) @ W_fc^T + b_fc
        out_ref[...] = (
            jnp.dot(h.astype(jnp.bfloat16), wfc_ref[...],
                    preferred_element_type=jnp.float32)
            + bfc_ref[...])

    return kernel


# ---------------------------------------------------------------------------
# Host-side weight preparation
# ---------------------------------------------------------------------------

def _prep_lstm_layer(w_ih, w_hh, b_ih, b_hh, H, Hp, Gt, in_p, packed):
    """Reorder gates [i,f,g,o] -> [i,f,o,g], pack/pad the gate axis to Gt,
    zero-pad the input axis, transpose for row-major matmuls, cast to bf16."""

    def prep(m, cols_p):
        i, f, g, o = (m[k * H:(k + 1) * H] for k in range(4))
        pad_c = cols_p - m.shape[1]
        if packed:
            cat = jnp.concatenate([i, f, o, g], axis=0)           # (4H, cols)
            return jnp.pad(cat, ((0, Gt - 4 * H), (0, pad_c)))    # (Gt, cols_p)
        return jnp.concatenate(
            [jnp.pad(blk, ((0, Hp - H), (0, pad_c))) for blk in (i, f, o, g)],
            axis=0)                                               # (4Hp, cols_p)

    w_ih_r = prep(w_ih, in_p)
    w_hh_r = prep(w_hh, Hp)
    b = b_ih + b_hh
    bi, bf_, bg, bo = (b[k * H:(k + 1) * H] for k in range(4))
    if packed:
        b_r = jnp.pad(jnp.concatenate([bi, bf_, bo, bg]), (0, Gt - 4 * H))
    else:
        b_r = jnp.concatenate([jnp.pad(v, (0, Hp - H)) for v in (bi, bf_, bo, bg)])
    return (w_ih_r.T.astype(jnp.bfloat16),                        # (in_p, Gt)
            w_hh_r.T.astype(jnp.bfloat16),                        # (Hp, Gt)
            b_r[None, :].astype(jnp.float32))                     # (1, Gt)


# ---------------------------------------------------------------------------
# Forward wrapper
# ---------------------------------------------------------------------------

def lstm_model_forward(x, params, *, num_layers, hidden_size):
    """x: (B, T, input_size) float32 (batch_first, like nn.LSTM(batch_first=True))."""
    B, T, I = x.shape
    H = hidden_size
    wfc, bfc = params["fc"]
    out_size = wfc.shape[0]

    vmem_phys, two_cores, mxu_rows = _device_info()
    # Generation-aware scoped-VMEM cap: headroom on v7x (64 MiB/TC physical),
    # up to ~100 MiB on v5e/v6e (128 MiB physical).
    vmem_cap = min(vmem_phys * 3 // 4, 100 * 1024 * 1024)

    # Lane/sublane-aligned padded sizes.
    Hp = _round_up(H, 128)
    Ip = _round_up(I, 128)
    Op = _round_up(out_size, 128)

    # Gate-lane packing: pack the concatenated 4H gate block to round_up(4H,128)
    # lanes (instead of 4*Hp) when it reduces both matmul width and EUP lanes.
    G4 = _round_up(4 * H, 128)
    packed = (G4 < 4 * Hp) and (2 * G4 <= 4 * Hp)
    Gt = G4 if packed else 4 * Hp
    shifts = (tuple(_shift_to_front(k * H, Gt) for k in (1, 2, 3))
              if packed else (0, 0, 0))

    # Batch tiling: Bt targets the MXU rows (128 v5e / 256 v6e,v7x); >= 2 even
    # tiles on a two-TensorCore chip so the "parallel" axis is really sharded.
    Bp8 = _round_up(B, 8)
    if two_cores and Bp8 >= 16:
        num_tiles = max(2, _cdiv(Bp8, mxu_rows))
        if num_tiles % 2:
            num_tiles += 1
    else:
        num_tiles = _cdiv(Bp8, min(mxu_rows, Bp8))
    Bt = _round_up(_cdiv(Bp8, num_tiles), 8)
    if num_tiles > 1:
        Bt = _round_up(Bt, 16)        # keep bf16 sublane tiles clean when tiled
    Bp = num_tiles * Bt

    # VMEM footprint (per grid step, incl. double-buffering) drives the time
    # chunk length Tc of the gates scratch and the vmem limit.
    layer_in = [Ip] + [Hp] * (num_layers - 1)
    w_bytes = sum((ip * Gt + Hp * Gt) * 2 + Gt * 4 for ip in layer_in)
    w_bytes += Hp * Op * 2 + Op * 4
    base = (2 * (T * Bt * Ip * 2)                  # x block (bf16, 2 buffers)
            + 2 * w_bytes                          # weights / biases
            + 2 * (Bt * Op * 4)                    # out block
            + (T * Bt * Hp * 2 if num_layers > 1 else 0))   # seq scratch (bf16)
    per_t = Bt * Gt * 4                            # one timestep of f32 gates
    slack = 2 * 1024 * 1024
    tc_mem = max(1, (vmem_cap - base - slack) // per_t)
    tc_cap = max(1, (4 * 1024 * 1024) // per_t)    # keep the chunk a few MiB
    Tc = int(max(1, min(T, tc_mem, tc_cap)))

    est = base + Tc * per_t
    vmem_limit = int(min(vmem_cap, max(32 * 1024 * 1024, 2 * est)))

    # Gate full unrolling of the recurrence on per-step live f32 state.
    per_step_live = Bt * (Gt + 3 * Hp) * 4
    if T <= 32 and per_step_live <= 128 * 1024:
        unroll = True
    elif per_step_live <= 512 * 1024:
        unroll = 4
    else:
        unroll = 2

    # Pad batch + features, go time-major, cast to bf16 (halves streamed bytes).
    x_p = jnp.pad(x.astype(jnp.float32), ((0, Bp - B), (0, 0), (0, Ip - I)))
    x_tm = jnp.transpose(x_p, (1, 0, 2)).astype(jnp.bfloat16)     # (T, Bp, Ip)

    inputs = [x_tm]
    in_specs = [pl.BlockSpec((T, Bt, Ip), lambda i: (0, i, 0))]
    for layer in range(num_layers):
        w_ih, w_hh, b_ih, b_hh = params["lstm"][layer]
        in_p = layer_in[layer]
        w_ih_T, w_hh_T, b = _prep_lstm_layer(w_ih, w_hh, b_ih, b_hh,
                                             H, Hp, Gt, in_p, packed)
        inputs += [w_ih_T, w_hh_T, b]
        in_specs += [
            pl.BlockSpec((in_p, Gt), lambda i: (0, 0)),
            pl.BlockSpec((Hp, Gt), lambda i: (0, 0)),
            pl.BlockSpec((1, Gt), lambda i: (0, 0)),
        ]

    wfc_p = jnp.pad(wfc, ((0, Op - out_size), (0, Hp - H)))
    bfc_p = jnp.pad(bfc, (0, Op - out_size))
    inputs += [wfc_p.T.astype(jnp.bfloat16), bfc_p[None, :].astype(jnp.float32)]
    in_specs += [pl.BlockSpec((Hp, Op), lambda i: (0, 0)),
                 pl.BlockSpec((1, Op), lambda i: (0, 0))]

    # Scratch: bounded gates chunk; bf16 sequence buffer only if a next layer
    # consumes it (in-place ping-pong: each row is read before it is rewritten).
    scratch = [pltpu.VMEM((Tc * Bt, Gt), jnp.float32)]
    if num_layers > 1:
        scratch.append(pltpu.VMEM((T * Bt, Hp), jnp.bfloat16))

    kernel = make_lstm_kernel(num_layers, T, Tc, Bt, H, Hp, Gt, Ip,
                              packed, unroll, shifts)

    out_padded = pl.pallas_call(
        kernel,
        out_shape=jax.ShapeDtypeStruct((Bp, Op), jnp.float32),
        grid=(num_tiles,),
        in_specs=in_specs,
        out_specs=pl.BlockSpec((Bt, Op), lambda i: (i, 0)),
        scratch_shapes=scratch,
        compiler_params=pltpu.CompilerParams(
            dimension_semantics=("parallel",),
            vmem_limit_bytes=vmem_limit),
    )(*inputs)
    return out_padded[:B, :out_size]


# ---------------------------------------------------------------------------
# Pure-JAX reference + init
# ---------------------------------------------------------------------------

def lstm_model_reference(x, params, *, num_layers, hidden_size):
    """f32 reference matching PyTorch nn.LSTM(batch_first=True) + Linear (eval)."""
    B, T, _ = x.shape
    H = hidden_size
    seq = x
    for layer in range(num_layers):
        w_ih, w_hh, b_ih, b_hh = params["lstm"][layer]
        h = jnp.zeros((B, H), jnp.float32)
        c = jnp.zeros((B, H), jnp.float32)
        outs = []
        for t in range(T):
            xt = seq[:, t, :]
            g = xt @ w_ih.T + h @ w_hh.T + b_ih + b_hh
            i_g = jax.nn.sigmoid(g[:, 0 * H:1 * H])
            f_g = jax.nn.sigmoid(g[:, 1 * H:2 * H])
            g_g = jnp.tanh(g[:, 2 * H:3 * H])
            o_g = jax.nn.sigmoid(g[:, 3 * H:4 * H])
            c = f_g * c + i_g * g_g
            h = o_g * jnp.tanh(c)
            outs.append(h)
        seq = jnp.stack(outs, axis=1)
    wfc, bfc = params["fc"]
    return seq[:, -1, :] @ wfc.T + bfc


def init_params(key, input_size, hidden_size, num_layers, output_size):
    """Deterministic init mirroring PyTorch shapes (uniform(-1/sqrt(H), 1/sqrt(H)))."""
    params = {"lstm": []}
    k = 1.0 / jnp.sqrt(jnp.float32(hidden_size))
    for layer in range(num_layers):
        in_dim = input_size if layer == 0 else hidden_size
        key, k1, k2, k3, k4 = jax.random.split(key, 5)
        w_ih = jax.random.uniform(k1, (4 * hidden_size, in_dim), jnp.float32, -k, k)
        w_hh = jax.random.uniform(k2, (4 * hidden_size, hidden_size), jnp.float32, -k, k)
        b_ih = jax.random.uniform(k3, (4 * hidden_size,), jnp.float32, -k, k)
        b_hh = jax.random.uniform(k4, (4 * hidden_size,), jnp.float32, -k, k)
        params["lstm"].append((w_ih, w_hh, b_ih, b_hh))
    key, k1, k2 = jax.random.split(key, 3)
    kf = 1.0 / jnp.sqrt(jnp.float32(hidden_size))
    wfc = jax.random.uniform(k1, (output_size, hidden_size), jnp.float32, -kf, kf)
    bfc = jax.random.uniform(k2, (output_size,), jnp.float32, -kf, kf)
    params["fc"] = (wfc, bfc)
    return params


if __name__ == "__main__":
    # Small shapes consistent with the module: batch=2, seq=8, input=16,
    # hidden=32, num_layers=2, output=4.
    B, T, INPUT, HIDDEN, LAYERS, OUT = 2, 8, 16, 32, 2, 4

    key = jax.random.PRNGKey(0)
    key, kx = jax.random.split(key)
    x = jax.random.normal(kx, (B, T, INPUT), jnp.float32)
    params = init_params(key, INPUT, HIDDEN, LAYERS, OUT)

    out = lstm_model_forward(x, params, num_layers=LAYERS, hidden_size=HIDDEN)
    out = jax.block_until_ready(out)

    ref = lstm_model_reference(x, params, num_layers=LAYERS, hidden_size=HIDDEN)
    assert out.shape == (B, OUT), out.shape
    # Tolerance accounts for bf16 matmul operands (f32 accumulation) vs the f32 reference.
    assert jnp.allclose(out, ref, atol=5e-2, rtol=5e-2), (out, ref)

    print("KERNEL_OK")
</pallas_src>

<mosaic_0001>
module attributes {stable_mosaic.version = 11 : i64} {
  func.func @probe(%arg0: memref<8x128xf32, #tpu.memory_space<vmem>>, %arg1: memref<8x128xf32, #tpu.memory_space<vmem>>) attributes {dimension_semantics = [], scalar_prefetch = 0 : i64, scratch_operands = 0 : i64, tpu.core_type = #tpu.core_type<tc>} {
    %c0 = arith.constant 0 : index
    %c0_0 = arith.constant 0 : index
    %0 = vector.load %arg0[%c0, %c0_0] : memref<8x128xf32, #tpu.memory_space<vmem>>, vector<8x128xf32>
    %c1_i32 = arith.constant 1 : i32
    %1 = tpu.dynamic_rotate %0 by %c1_i32 dim 1 : vector<8x128xf32>, i32 -> vector<8x128xf32>
    %c0_1 = arith.constant 0 : index
    %c0_2 = arith.constant 0 : index
    %2 = vector.load %arg1[%c0_1, %c0_2] : memref<8x128xf32, #tpu.memory_space<vmem>>, vector<8x128xf32>
    tpu.vector_store %arg1[%c0_1, %c0_2], %1 {strides = array<i32>} : memref<8x128xf32, #tpu.memory_space<vmem>>, vector<8x128xf32>,
    return
  }
}

</mosaic_0001>

<bundles_post_ra>
// kernel: tpu_custom_call.1
= control target key start
LH: loop header
LB: loop body
LE: loop exit
PB: predicated region body
PF: predicated region fallthrough
CT: control target
= control target key end

     0   :  { %6 = vsyncpa [#allocation3], 0  ;;  %s118_s0 = inlined_call_operand.hbm [shape: f32[8,128], index: 0, kind: input, shape index: {}]   ;;  %s119_s1 = inlined_call_operand.hbm [shape: f32[8,128], index: 1, kind: output, shape index: {}]  }
   0x1   :  { %7 = vsyncpa [#allocation4], 0  ;;  %s13_s8 = sshll.u32 %s118_s0, 4  ;;  %s99_s9 = smov [#allocation2]   ;;  %s14_s8 = int_to_ptr.hbm [resolvable:$true] %s13_s8 }
   0x2   :  { %s15_s10 = sshll.u32 %s99_s9, 4  ;;  %s16_s10 = int_to_ptr.vmem [resolvable:$true] %s15_s10 }
   0x3   :  { %18 = dma.hbm_to_vmem [thread:$0]  %s14_s8, 128, %s16_s10, [#allocation3]  }
   0x4   :  { %95 = dma.done.wait [#allocation3], 128  }
   0x5   :  { %96 = vsyncadd [#allocation3], 4294967168  ;;  %v23_v0 = vld [vmem:[#allocation2] sm:$0xff]  ;;  %s100_s11 = smov 1   ;;  %s101_s12 = smov [#allocation5]  }
   0x6   :  { %24 = vrot.lane.b32.xlu0 %v23_v0, %s100_s11  ;;  %s32_s13 = sshll.u32 %s101_s12, 4  ;;  %s34_s16 = sshll.u32 %s119_s1, 4  ;;  %s33_s13 = int_to_ptr.vmem [resolvable:$true] %s32_s13  ;;  %s35_s16 = int_to_ptr.hbm [resolvable:$true] %s34_s16 }
  0x78   :  { %v25_v1 = vpop.permute.xlu0 %24 }
  0x79   :  { %26 = vst [vmem:[#allocation5] sm:$0xff] %v25_v1 }
  0x7a   :  { %37 = dma.vmem_to_hbm [thread:$0]  %s33_s13, 128, %s35_s16, [#allocation4]  }
  0x7b   :  { %97 = dma.done.wait [#allocation4], 128  }
  0x7c   :  { %98 = vsyncadd [#allocation4], 4294967168 }
  0x7d   :  { %42 = vsyncpa [#allocation3], 1 }
  0x7e   :  { %43 = vsyncpa [#allocation4], 1 }

</bundles_post_ra>
